<compile_context>
chip_gen: v5e
topology: v5e:2x2
jax: 0.10.0
libtpu: 0.0.40
codegen_flags: <defaults>
</compile_context>

<pallas_src>
import jax
import jax.numpy as jnp
import numpy as np
from jax.experimental import pallas as pl
from jax.experimental.pallas import tpu as pltpu


def _block_layer_kernel(x_ref, wx_ref, bx_ref, wq_ref, st_ref, m2_ref, acts_ref):
    """Fused BlockLayer forward for one batch tile.

    x_ref    : (T, Bt, D)  time-major input tile
    wx_ref   : (D, 2F)     [Wu | Wu@Wv]   (value projection precomposed)
    bx_ref   : (1, 2F)     [bu+bm | (bu+bm)@Wv + bv]
    wq_ref   : (F, 2F)     [Wm | Wm@Wv]   (block-diagonal, all blocks fused)
    st_ref   : (1, F)      concatenated 'set' parameters
    m2_ref   : (F, F)      per-block mean-and-broadcast operator (1/U per block)
    acts_ref : (Bt, T*F)   lane-dense output: tanh(v_t) at lanes [t*F, (t+1)*F)
    """
    Bt, TF = acts_ref.shape
    F = st_ref.shape[-1]
    T = TF // F
    D = x_ref.shape[-1]

    wq = wq_ref[...]
    m2 = m2_ref[...]
    # Loop-invariant broadcast hoisted out of the unrolled T loop (JAX does
    # not CSE broadcast_in_dim).
    st_b = jnp.broadcast_to(st_ref[...], (Bt, F))

    # Hoisted input projection: ONE (T*Bt, D) x (D, 2F) MXU matmul covering
    # both the 'units' path and the precomposed 'value' path.  Time-major, so
    # each per-step slice below is a contiguous (Bt, 2F) read.
    x2 = x_ref[...].reshape(T * Bt, D)
    xu = jnp.dot(x2, wx_ref[...], preferred_element_type=jnp.float32) + bx_ref[...]

    # Latch state starts at zero (Latch.__init__: torch.zeros(size)).
    # TODO(synk): PyTorch's Latch persists q_train/q_valid across forward()
    # calls; here every call starts from the zero latch (fresh-module
    # semantics).
    q = jnp.zeros((Bt, F), jnp.float32)

    # T is small and static -> fully unrolled serial recurrence.
    # TODO(synk): for T beyond ~32 switch to lax.fori_loop with q in VMEM
    # scratch and chunked activation writes, to bound vreg live ranges.
    acts = []
    for ti in range(T):
        # Single per-step serial MXU matmul: q @ [Wm | Wm@Wv].
        qw = jnp.dot(q, wq, preferred_element_type=jnp.float32)
        vv = xu[ti * Bt:(ti + 1) * Bt, :] + qw           # (Bt, 2F)
        v = vv[:, :F]                                     # units + memory
        vl = vv[:, F:]                                    # value(v) + bv (precomposed)
        # Latch.t: hardtanh(set*v, 0, 1).mean(-1) >= 0.75 per block; the m2
        # matmul returns the mean already broadcast over each block's lanes.
        s = jnp.clip(st_b * v, 0.0, 1.0)
        mean_b = jnp.dot(s, m2, preferred_element_type=jnp.float32)
        q = jnp.where(mean_b >= 0.75, vl, q)
        acts.append(jnp.tanh(v))

    # One bulk lane-dense store instead of T masked 32-lane stores.
    acts_ref[...] = jnp.concatenate(acts, axis=-1)


def _block_diag(w):
    """(NB, U, U) per-block weights -> (NB*U, NB*U) block-diagonal matrix."""
    NB, U, _ = w.shape
    eye = jnp.eye(NB, dtype=w.dtype)
    return (w[:, :, None, :] * eye[:, None, :, None]).reshape(NB * U, NB * U)


def _pick_b_tile(B):
    """Largest batch tile (multiple of 8, <= 512) that divides B; else B."""
    for cand in (512, 256, 128, 64, 32, 16, 8):
        if B % cand == 0:
            return cand
    return B


@jax.jit
def block_layer_forward(x, wu, bu, wm, bm, st, wv, bv):
    """x: (B, T, D) f32.  Per-block params:
         wu (NB, D, U), bu (NB, 1, U), wm (NB, U, U), bm (NB, 1, U),
         st (NB, 1, U), wv (NB, U, U), bv (NB, 1, U).
       Returns (B, T, NB*U), matching torch.cat([block(x)[0] ...], dim=-1)."""
    B, T, D = x.shape
    NB, _, U = wu.shape
    F = NB * U

    # --- fuse per-block weights along the feature dim (block i -> lanes [iU,(i+1)U)) ---
    wu_f = jnp.transpose(wu, (1, 0, 2)).reshape(D, F)       # concat along out dim
    bub_f = (bu + bm).reshape(1, F)                         # bu + bm folded together
    st_f = st.reshape(1, F)
    bv_f = bv.reshape(1, F)
    wm_f = _block_diag(wm)                                  # (F, F)
    wv_f = _block_diag(wv)                                  # (F, F)

    # --- precompose the 'value' projection into the hoisted and recurrent matmuls ---
    wuv_f = wu_f @ wv_f                                     # (D, F)
    wmv_f = wm_f @ wv_f                                     # (F, F)
    buv_f = bub_f @ wv_f + bv_f                             # (1, F)

    wx = jnp.concatenate([wu_f, wuv_f], axis=1)             # (D, 2F)
    bx = jnp.concatenate([bub_f, buv_f], axis=1)            # (1, 2F)
    wq = jnp.concatenate([wm_f, wmv_f], axis=1)             # (F, 2F)

    # Per-block mean-and-broadcast operator: m2[i, j] = 1/U if same block else 0.
    blk = jnp.arange(F, dtype=jnp.int32) // U
    m2 = jnp.where(blk[:, None] == blk[None, :], 1.0 / U, 0.0).astype(jnp.float32)

    # Time-major staging: per-step reads inside the kernel become contiguous.
    x_tm = jnp.transpose(x, (1, 0, 2))                      # (T, B, D)

    b_tile = _pick_b_tile(B)
    grid = (B // b_tile,)

    acts_flat = pl.pallas_call(
        _block_layer_kernel,
        out_shape=jax.ShapeDtypeStruct((B, T * F), jnp.float32),
        grid_spec=pltpu.PrefetchScalarGridSpec(
            num_scalar_prefetch=0,
            grid=grid,
            in_specs=[
                pl.BlockSpec((T, b_tile, D), lambda i: (0, i, 0)),   # x (time-major)
                pl.BlockSpec((D, 2 * F), lambda i: (0, 0)),          # wx (pinned)
                pl.BlockSpec((1, 2 * F), lambda i: (0, 0)),          # bx (pinned)
                pl.BlockSpec((F, 2 * F), lambda i: (0, 0)),          # wq (pinned)
                pl.BlockSpec((1, F), lambda i: (0, 0)),              # set (pinned)
                pl.BlockSpec((F, F), lambda i: (0, 0)),              # m2 (pinned)
            ],
            out_specs=pl.BlockSpec((b_tile, T * F), lambda i: (i, 0)),
        ),
        compiler_params=pltpu.CompilerParams(
            dimension_semantics=("parallel",),          # batch is embarrassingly parallel
            vmem_limit_bytes=48 * 1024 * 1024,          # explicit budget (v7x has 64 MiB)
        ),
    )(x_tm, wx, bx, wq, st_f, m2)

    # Free reshape: lane-dense (B, T*F) -> (B, T, F).
    return acts_flat.reshape(B, T, F)


def init_params(key, num_blocks, input_dim, units_per_block):
    """Deterministic parameter init (PyTorch Linear default: U(-1/sqrt(fan_in), +))."""
    U, D = units_per_block, input_dim
    ks = jax.random.split(key, 7)

    def lin(kw, kb, fan_in, fan_out):
        bound = 1.0 / jnp.sqrt(jnp.float32(fan_in))
        w = jax.random.uniform(kw, (num_blocks, fan_in, fan_out),
                               jnp.float32, -bound, bound)
        b = jax.random.uniform(kb, (num_blocks, 1, fan_out),
                               jnp.float32, -bound, bound)
        return w, b

    wu, bu = lin(ks[0], ks[1], D, U)   # units : Linear(input_dim, U)
    wm, bm = lin(ks[2], ks[3], U, U)   # memory: Linear(U, U)
    wv, bv = lin(ks[4], ks[5], U, U)   # value : Linear(U, U)
    # torch inits `set` to zeros (which makes the latch inert); use positive
    # random values here so the latch/gate update path is actually exercised
    # by the self-check below.
    st = jax.random.uniform(ks[6], (num_blocks, 1, U), jnp.float32, 2.0, 6.0)
    return wu, bu, wm, bm, st, wv, bv


def _reference_forward(x, wu, bu, wm, bm, st, wv, bv):
    """Pure-JAX reference mirroring the PyTorch module loop structure."""
    B, T, _ = x.shape
    NB, _, U = wu.shape
    outs = []
    for i in range(NB):
        q = jnp.zeros((B, U), jnp.float32)
        acts = []
        for ti in range(T):
            v = x[:, ti] @ wu[i] + bu[i] + q @ wm[i] + bm[i]
            s = jnp.clip(st[i] * v, 0.0, 1.0)
            gate = (s.mean(-1, keepdims=True) >= 0.75).astype(jnp.float32)
            q = (v @ wv[i] + bv[i]) * gate + q * (1.0 - gate)
            acts.append(jnp.tanh(v))
        outs.append(jnp.stack(acts, axis=1))     # (B, T, U)
    return jnp.concatenate(outs, axis=-1)        # (B, T, NB*U)


if __name__ == "__main__":
    # Small shapes consistent with the module's forward:
    #   x: (batch=2, seq=8, input_dim=32); num_blocks=4, output_dim=32 -> U=8.
    B, T, D = 2, 8, 32
    num_blocks, output_dim = 4, 32
    U = output_dim // num_blocks

    key = jax.random.PRNGKey(0)
    kx, kp = jax.random.split(key)
    x = jax.random.normal(kx, (B, T, D), jnp.float32)
    params = init_params(kp, num_blocks, D, U)

    out = block_layer_forward(x, *params)
    jax.block_until_ready(out)
    assert out.shape == (B, T, output_dim), out.shape

    ref = _reference_forward(x, *params)
    np.testing.assert_allclose(np.asarray(out), np.asarray(ref),
                               atol=2e-5, rtol=2e-5)
    print("KERNEL_OK")
</pallas_src>

<mosaic_0001>
module attributes {stable_mosaic.version = 11 : i64} {
  func.func @_block_layer_kernel(%arg0: i32, %arg1: memref<8x2x32xf32, #tpu.memory_space<vmem>>, %arg2: memref<32x64xf32, #tpu.memory_space<vmem>>, %arg3: memref<1x64xf32, #tpu.memory_space<vmem>>, %arg4: memref<32x64xf32, #tpu.memory_space<vmem>>, %arg5: memref<1x32xf32, #tpu.memory_space<vmem>>, %arg6: memref<32x32xf32, #tpu.memory_space<vmem>>, %arg7: memref<2x256xf32, #tpu.memory_space<vmem>>) attributes {dimension_semantics = [#tpu.dimension_semantics<parallel>], iteration_bounds = array<i64: 1>, scalar_prefetch = 0 : i64, scratch_operands = 0 : i64, tpu.core_type = #tpu.core_type<tc>, window_params = [{transform_indices = @transform_0, window_bounds = array<i64: 8, 2, 32>}, {pipeline_mode = #tpu.pipeline_mode<synchronous>, transform_indices = @transform_1, window_bounds = array<i64: 32, 64>}, {pipeline_mode = #tpu.pipeline_mode<synchronous>, transform_indices = @transform_2, window_bounds = array<i64: 1, 64>}, {pipeline_mode = #tpu.pipeline_mode<synchronous>, transform_indices = @transform_3, window_bounds = array<i64: 32, 64>}, {pipeline_mode = #tpu.pipeline_mode<synchronous>, transform_indices = @transform_4, window_bounds = array<i64: 1, 32>}, {pipeline_mode = #tpu.pipeline_mode<synchronous>, transform_indices = @transform_5, window_bounds = array<i64: 32, 32>}, {transform_indices = @transform_6, window_bounds = array<i64: 2, 256>}]} {
    %c0 = arith.constant 0 : index
    %c0_0 = arith.constant 0 : index
    %0 = vector.load %arg4[%c0, %c0_0] : memref<32x64xf32, #tpu.memory_space<vmem>>, vector<32x64xf32>
    %c0_1 = arith.constant 0 : index
    %c0_2 = arith.constant 0 : index
    %1 = vector.load %arg6[%c0_1, %c0_2] : memref<32x32xf32, #tpu.memory_space<vmem>>, vector<32x32xf32>
    %c0_3 = arith.constant 0 : index
    %c0_4 = arith.constant 0 : index
    %2 = vector.load %arg5[%c0_3, %c0_4] : memref<1x32xf32, #tpu.memory_space<vmem>>, vector<1x32xf32>
    %3 = vector.shape_cast %2 : vector<1x32xf32> to vector<1x32xf32>
    %4 = vector.broadcast %3 : vector<1x32xf32> to vector<2x32xf32>
    %c0_5 = arith.constant 0 : index
    %c0_6 = arith.constant 0 : index
    %c0_7 = arith.constant 0 : index
    %5 = vector.load %arg1[%c0_5, %c0_6, %c0_7] : memref<8x2x32xf32, #tpu.memory_space<vmem>>, vector<8x2x32xf32>
    %6 = vector.shape_cast %5 : vector<8x2x32xf32> to vector<16x32xf32>
    %c0_8 = arith.constant 0 : index
    %c0_9 = arith.constant 0 : index
    %7 = vector.load %arg2[%c0_8, %c0_9] : memref<32x64xf32, #tpu.memory_space<vmem>>, vector<32x64xf32>
    %cst = arith.constant dense<0.000000e+00> : vector<16x64xf32>
    %8 = tpu.matmul %6, %7, %cst {dimension_numbers = #tpu.dot_dimension_numbers<[1], [0], [0], [1], [0, 0, 1, 1], [], []>} : vector<16x32xf32>, vector<32x64xf32>, vector<16x64xf32> -> vector<16x64xf32>
    %c0_10 = arith.constant 0 : index
    %c0_11 = arith.constant 0 : index
    %9 = vector.load %arg3[%c0_10, %c0_11] : memref<1x64xf32, #tpu.memory_space<vmem>>, vector<1x64xf32>
    %10 = vector.broadcast %9 : vector<1x64xf32> to vector<16x64xf32>
    %11 = arith.addf %8, %10 : vector<16x64xf32>
    %cst_12 = arith.constant 0.000000e+00 : f32
    %12 = vector.broadcast %cst_12 : f32 to vector<2x32xf32>
    %cst_13 = arith.constant dense<0.000000e+00> : vector<2x64xf32>
    %13 = tpu.matmul %12, %0, %cst_13 {dimension_numbers = #tpu.dot_dimension_numbers<[1], [0], [0], [1], [0, 0, 1, 1], [], []>} : vector<2x32xf32>, vector<32x64xf32>, vector<2x64xf32> -> vector<2x64xf32>
    %14 = vector.extract_strided_slice %11 {offsets = [0, 0], sizes = [2, 64], strides = [1, 1]} : vector<16x64xf32> to vector<2x64xf32>
    %15 = arith.addf %14, %13 : vector<2x64xf32>
    %16 = vector.extract_strided_slice %15 {offsets = [0, 0], sizes = [2, 32], strides = [1, 1]} : vector<2x64xf32> to vector<2x32xf32>
    %17 = vector.extract_strided_slice %15 {offsets = [0, 32], sizes = [2, 32], strides = [1, 1]} : vector<2x64xf32> to vector<2x32xf32>
    %18 = arith.mulf %4, %16 : vector<2x32xf32>
    %cst_14 = arith.constant 0.000000e+00 : f32
    %cst_15 = arith.constant 1.000000e+00 : f32
    %19 = vector.broadcast %cst_14 : f32 to vector<2x32xf32>
    %20 = arith.maximumf %19, %18 : vector<2x32xf32>
    %21 = vector.broadcast %cst_15 : f32 to vector<2x32xf32>
    %22 = arith.minimumf %21, %20 : vector<2x32xf32>
    %cst_16 = arith.constant dense<0.000000e+00> : vector<2x32xf32>
    %23 = tpu.matmul %22, %1, %cst_16 {dimension_numbers = #tpu.dot_dimension_numbers<[1], [0], [0], [1], [0, 0, 1, 1], [], []>} : vector<2x32xf32>, vector<32x32xf32>, vector<2x32xf32> -> vector<2x32xf32>
    %cst_17 = arith.constant 7.500000e-01 : f32
    %24 = vector.broadcast %cst_17 : f32 to vector<2x32xf32>
    %25 = arith.cmpf oge, %23, %24 : vector<2x32xf32>
    %26 = arith.select %25, %17, %12 : vector<2x32xi1>, vector<2x32xf32>
    %27 = math.tanh %16 : vector<2x32xf32>
    %cst_18 = arith.constant dense<0.000000e+00> : vector<2x64xf32>
    %28 = tpu.matmul %26, %0, %cst_18 {dimension_numbers = #tpu.dot_dimension_numbers<[1], [0], [0], [1], [0, 0, 1, 1], [], []>} : vector<2x32xf32>, vector<32x64xf32>, vector<2x64xf32> -> vector<2x64xf32>
    %29 = vector.extract_strided_slice %11 {offsets = [2, 0], sizes = [2, 64], strides = [1, 1]} : vector<16x64xf32> to vector<2x64xf32>
    %30 = arith.addf %29, %28 : vector<2x64xf32>
    %31 = vector.extract_strided_slice %30 {offsets = [0, 0], sizes = [2, 32], strides = [1, 1]} : vector<2x64xf32> to vector<2x32xf32>
    %32 = vector.extract_strided_slice %30 {offsets = [0, 32], sizes = [2, 32], strides = [1, 1]} : vector<2x64xf32> to vector<2x32xf32>
    %33 = arith.mulf %4, %31 : vector<2x32xf32>
    %cst_19 = arith.constant 0.000000e+00 : f32
    %cst_20 = arith.constant 1.000000e+00 : f32
    %34 = vector.broadcast %cst_19 : f32 to vector<2x32xf32>
    %35 = arith.maximumf %34, %33 : vector<2x32xf32>
    %36 = vector.broadcast %cst_20 : f32 to vector<2x32xf32>
    %37 = arith.minimumf %36, %35 : vector<2x32xf32>
    %cst_21 = arith.constant dense<0.000000e+00> : vector<2x32xf32>
    %38 = tpu.matmul %37, %1, %cst_21 {dimension_numbers = #tpu.dot_dimension_numbers<[1], [0], [0], [1], [0, 0, 1, 1], [], []>} : vector<2x32xf32>, vector<32x32xf32>, vector<2x32xf32> -> vector<2x32xf32>
    %cst_22 = arith.constant 7.500000e-01 : f32
    %39 = vector.broadcast %cst_22 : f32 to vector<2x32xf32>
    %40 = arith.cmpf oge, %38, %39 : vector<2x32xf32>
    %41 = arith.select %40, %32, %26 : vector<2x32xi1>, vector<2x32xf32>
    %42 = math.tanh %31 : vector<2x32xf32>
    %cst_23 = arith.constant dense<0.000000e+00> : vector<2x64xf32>
    %43 = tpu.matmul %41, %0, %cst_23 {dimension_numbers = #tpu.dot_dimension_numbers<[1], [0], [0], [1], [0, 0, 1, 1], [], []>} : vector<2x32xf32>, vector<32x64xf32>, vector<2x64xf32> -> vector<2x64xf32>
    %44 = vector.extract_strided_slice %11 {offsets = [4, 0], sizes = [2, 64], strides = [1, 1]} : vector<16x64xf32> to vector<2x64xf32>
    %45 = arith.addf %44, %43 : vector<2x64xf32>
    %46 = vector.extract_strided_slice %45 {offsets = [0, 0], sizes = [2, 32], strides = [1, 1]} : vector<2x64xf32> to vector<2x32xf32>
    %47 = vector.extract_strided_slice %45 {offsets = [0, 32], sizes = [2, 32], strides = [1, 1]} : vector<2x64xf32> to vector<2x32xf32>
    %48 = arith.mulf %4, %46 : vector<2x32xf32>
    %cst_24 = arith.constant 0.000000e+00 : f32
    %cst_25 = arith.constant 1.000000e+00 : f32
    %49 = vector.broadcast %cst_24 : f32 to vector<2x32xf32>
    %50 = arith.maximumf %49, %48 : vector<2x32xf32>
    %51 = vector.broadcast %cst_25 : f32 to vector<2x32xf32>
    %52 = arith.minimumf %51, %50 : vector<2x32xf32>
    %cst_26 = arith.constant dense<0.000000e+00> : vector<2x32xf32>
    %53 = tpu.matmul %52, %1, %cst_26 {dimension_numbers = #tpu.dot_dimension_numbers<[1], [0], [0], [1], [0, 0, 1, 1], [], []>} : vector<2x32xf32>, vector<32x32xf32>, vector<2x32xf32> -> vector<2x32xf32>
    %cst_27 = arith.constant 7.500000e-01 : f32
    %54 = vector.broadcast %cst_27 : f32 to vector<2x32xf32>
    %55 = arith.cmpf oge, %53, %54 : vector<2x32xf32>
    %56 = arith.select %55, %47, %41 : vector<2x32xi1>, vector<2x32xf32>
    %57 = math.tanh %46 : vector<2x32xf32>
    %cst_28 = arith.constant dense<0.000000e+00> : vector<2x64xf32>
    %58 = tpu.matmul %56, %0, %cst_28 {dimension_numbers = #tpu.dot_dimension_numbers<[1], [0], [0], [1], [0, 0, 1, 1], [], []>} : vector<2x32xf32>, vector<32x64xf32>, vector<2x64xf32> -> vector<2x64xf32>
    %59 = vector.extract_strided_slice %11 {offsets = [6, 0], sizes = [2, 64], strides = [1, 1]} : vector<16x64xf32> to vector<2x64xf32>
    %60 = arith.addf %59, %58 : vector<2x64xf32>
    %61 = vector.extract_strided_slice %60 {offsets = [0, 0], sizes = [2, 32], strides = [1, 1]} : vector<2x64xf32> to vector<2x32xf32>
    %62 = vector.extract_strided_slice %60 {offsets = [0, 32], sizes = [2, 32], strides = [1, 1]} : vector<2x64xf32> to vector<2x32xf32>
    %63 = arith.mulf %4, %61 : vector<2x32xf32>
    %cst_29 = arith.constant 0.000000e+00 : f32
    %cst_30 = arith.constant 1.000000e+00 : f32
    %64 = vector.broadcast %cst_29 : f32 to vector<2x32xf32>
    %65 = arith.maximumf %64, %63 : vector<2x32xf32>
    %66 = vector.broadcast %cst_30 : f32 to vector<2x32xf32>
    %67 = arith.minimumf %66, %65 : vector<2x32xf32>
    %cst_31 = arith.constant dense<0.000000e+00> : vector<2x32xf32>
    %68 = tpu.matmul %67, %1, %cst_31 {dimension_numbers = #tpu.dot_dimension_numbers<[1], [0], [0], [1], [0, 0, 1, 1], [], []>} : vector<2x32xf32>, vector<32x32xf32>, vector<2x32xf32> -> vector<2x32xf32>
    %cst_32 = arith.constant 7.500000e-01 : f32
    %69 = vector.broadcast %cst_32 : f32 to vector<2x32xf32>
    %70 = arith.cmpf oge, %68, %69 : vector<2x32xf32>
    %71 = arith.select %70, %62, %56 : vector<2x32xi1>, vector<2x32xf32>
    %72 = math.tanh %61 : vector<2x32xf32>
    %cst_33 = arith.constant dense<0.000000e+00> : vector<2x64xf32>
    %73 = tpu.matmul %71, %0, %cst_33 {dimension_numbers = #tpu.dot_dimension_numbers<[1], [0], [0], [1], [0, 0, 1, 1], [], []>} : vector<2x32xf32>, vector<32x64xf32>, vector<2x64xf32> -> vector<2x64xf32>
    %74 = vector.extract_strided_slice %11 {offsets = [8, 0], sizes = [2, 64], strides = [1, 1]} : vector<16x64xf32> to vector<2x64xf32>
    %75 = arith.addf %74, %73 : vector<2x64xf32>
    %76 = vector.extract_strided_slice %75 {offsets = [0, 0], sizes = [2, 32], strides = [1, 1]} : vector<2x64xf32> to vector<2x32xf32>
    %77 = vector.extract_strided_slice %75 {offsets = [0, 32], sizes = [2, 32], strides = [1, 1]} : vector<2x64xf32> to vector<2x32xf32>
    %78 = arith.mulf %4, %76 : vector<2x32xf32>
    %cst_34 = arith.constant 0.000000e+00 : f32
    %cst_35 = arith.constant 1.000000e+00 : f32
    %79 = vector.broadcast %cst_34 : f32 to vector<2x32xf32>
    %80 = arith.maximumf %79, %78 : vector<2x32xf32>
    %81 = vector.broadcast %cst_35 : f32 to vector<2x32xf32>
    %82 = arith.minimumf %81, %80 : vector<2x32xf32>
    %cst_36 = arith.constant dense<0.000000e+00> : vector<2x32xf32>
    %83 = tpu.matmul %82, %1, %cst_36 {dimension_numbers = #tpu.dot_dimension_numbers<[1], [0], [0], [1], [0, 0, 1, 1], [], []>} : vector<2x32xf32>, vector<32x32xf32>, vector<2x32xf32> -> vector<2x32xf32>
    %cst_37 = arith.constant 7.500000e-01 : f32
    %84 = vector.broadcast %cst_37 : f32 to vector<2x32xf32>
    %85 = arith.cmpf oge, %83, %84 : vector<2x32xf32>
    %86 = arith.select %85, %77, %71 : vector<2x32xi1>, vector<2x32xf32>
    %87 = math.tanh %76 : vector<2x32xf32>
    %cst_38 = arith.constant dense<0.000000e+00> : vector<2x64xf32>
    %88 = tpu.matmul %86, %0, %cst_38 {dimension_numbers = #tpu.dot_dimension_numbers<[1], [0], [0], [1], [0, 0, 1, 1], [], []>} : vector<2x32xf32>, vector<32x64xf32>, vector<2x64xf32> -> vector<2x64xf32>
    %89 = vector.extract_strided_slice %11 {offsets = [10, 0], sizes = [2, 64], strides = [1, 1]} : vector<16x64xf32> to vector<2x64xf32>
    %90 = arith.addf %89, %88 : vector<2x64xf32>
    %91 = vector.extract_strided_slice %90 {offsets = [0, 0], sizes = [2, 32], strides = [1, 1]} : vector<2x64xf32> to vector<2x32xf32>
    %92 = vector.extract_strided_slice %90 {offsets = [0, 32], sizes = [2, 32], strides = [1, 1]} : vector<2x64xf32> to vector<2x32xf32>
    %93 = arith.mulf %4, %91 : vector<2x32xf32>
    %cst_39 = arith.constant 0.000000e+00 : f32
    %cst_40 = arith.constant 1.000000e+00 : f32
    %94 = vector.broadcast %cst_39 : f32 to vector<2x32xf32>
    %95 = arith.maximumf %94, %93 : vector<2x32xf32>
    %96 = vector.broadcast %cst_40 : f32 to vector<2x32xf32>
    %97 = arith.minimumf %96, %95 : vector<2x32xf32>
    %cst_41 = arith.constant dense<0.000000e+00> : vector<2x32xf32>
    %98 = tpu.matmul %97, %1, %cst_41 {dimension_numbers = #tpu.dot_dimension_numbers<[1], [0], [0], [1], [0, 0, 1, 1], [], []>} : vector<2x32xf32>, vector<32x32xf32>, vector<2x32xf32> -> vector<2x32xf32>
    %cst_42 = arith.constant 7.500000e-01 : f32
    %99 = vector.broadcast %cst_42 : f32 to vector<2x32xf32>
    %100 = arith.cmpf oge, %98, %99 : vector<2x32xf32>
    %101 = arith.select %100, %92, %86 : vector<2x32xi1>, vector<2x32xf32>
    %102 = math.tanh %91 : vector<2x32xf32>
    %cst_43 = arith.constant dense<0.000000e+00> : vector<2x64xf32>
    %103 = tpu.matmul %101, %0, %cst_43 {dimension_numbers = #tpu.dot_dimension_numbers<[1], [0], [0], [1], [0, 0, 1, 1], [], []>} : vector<2x32xf32>, vector<32x64xf32>, vector<2x64xf32> -> vector<2x64xf32>
    %104 = vector.extract_strided_slice %11 {offsets = [12, 0], sizes = [2, 64], strides = [1, 1]} : vector<16x64xf32> to vector<2x64xf32>
    %105 = arith.addf %104, %103 : vector<2x64xf32>
    %106 = vector.extract_strided_slice %105 {offsets = [0, 0], sizes = [2, 32], strides = [1, 1]} : vector<2x64xf32> to vector<2x32xf32>
    %107 = vector.extract_strided_slice %105 {offsets = [0, 32], sizes = [2, 32], strides = [1, 1]} : vector<2x64xf32> to vector<2x32xf32>
    %108 = arith.mulf %4, %106 : vector<2x32xf32>
    %cst_44 = arith.constant 0.000000e+00 : f32
    %cst_45 = arith.constant 1.000000e+00 : f32
    %109 = vector.broadcast %cst_44 : f32 to vector<2x32xf32>
    %110 = arith.maximumf %109, %108 : vector<2x32xf32>
    %111 = vector.broadcast %cst_45 : f32 to vector<2x32xf32>
    %112 = arith.minimumf %111, %110 : vector<2x32xf32>
    %cst_46 = arith.constant dense<0.000000e+00> : vector<2x32xf32>
    %113 = tpu.matmul %112, %1, %cst_46 {dimension_numbers = #tpu.dot_dimension_numbers<[1], [0], [0], [1], [0, 0, 1, 1], [], []>} : vector<2x32xf32>, vector<32x32xf32>, vector<2x32xf32> -> vector<2x32xf32>
    %cst_47 = arith.constant 7.500000e-01 : f32
    %114 = vector.broadcast %cst_47 : f32 to vector<2x32xf32>
    %115 = arith.cmpf oge, %113, %114 : vector<2x32xf32>
    %116 = arith.select %115, %107, %101 : vector<2x32xi1>, vector<2x32xf32>
    %117 = math.tanh %106 : vector<2x32xf32>
    %cst_48 = arith.constant dense<0.000000e+00> : vector<2x64xf32>
    %118 = tpu.matmul %116, %0, %cst_48 {dimension_numbers = #tpu.dot_dimension_numbers<[1], [0], [0], [1], [0, 0, 1, 1], [], []>} : vector<2x32xf32>, vector<32x64xf32>, vector<2x64xf32> -> vector<2x64xf32>
    %119 = vector.extract_strided_slice %11 {offsets = [14, 0], sizes = [2, 64], strides = [1, 1]} : vector<16x64xf32> to vector<2x64xf32>
    %120 = arith.addf %119, %118 : vector<2x64xf32>
    %121 = vector.extract_strided_slice %120 {offsets = [0, 0], sizes = [2, 32], strides = [1, 1]} : vector<2x64xf32> to vector<2x32xf32>
    %122 = math.tanh %121 : vector<2x32xf32>
    %123 = tpu.concatenate %27, %42, %57, %72, %87, %102, %117, %122 in 1 : vector<2x32xf32>, vector<2x32xf32>, vector<2x32xf32>, vector<2x32xf32>, vector<2x32xf32>, vector<2x32xf32>, vector<2x32xf32>, vector<2x32xf32> -> vector<2x256xf32>
    %c0_49 = arith.constant 0 : index
    %c0_50 = arith.constant 0 : index
    %124 = vector.load %arg7[%c0_49, %c0_50] : memref<2x256xf32, #tpu.memory_space<vmem>>, vector<2x256xf32>
    tpu.vector_store %arg7[%c0_49, %c0_50], %123 {strides = array<i32>} : memref<2x256xf32, #tpu.memory_space<vmem>>, vector<2x256xf32>,
    return
  }
  func.func @transform_0(%arg0: i32) -> (i32, i32, i32) {
    %c0_i32 = arith.constant 0 : i32
    %c0_i32_0 = arith.constant 0 : i32
    %c0_i32_1 = arith.constant 0 : i32
    return %c0_i32, %arg0, %c0_i32_0 : i32, i32, i32
  }
  func.func @transform_1(%arg0: i32) -> (i32, i32) {
    %c0_i32 = arith.constant 0 : i32
    %c0_i32_0 = arith.constant 0 : i32
    %c0_i32_1 = arith.constant 0 : i32
    return %c0_i32, %c0_i32_0 : i32, i32
  }
  func.func @transform_2(%arg0: i32) -> (i32, i32) {
    %c0_i32 = arith.constant 0 : i32
    %c0_i32_0 = arith.constant 0 : i32
    %c0_i32_1 = arith.constant 0 : i32
    return %c0_i32, %c0_i32_0 : i32, i32
  }
  func.func @transform_3(%arg0: i32) -> (i32, i32) {
    %c0_i32 = arith.constant 0 : i32
    %c0_i32_0 = arith.constant 0 : i32
    %c0_i32_1 = arith.constant 0 : i32
    return %c0_i32, %c0_i32_0 : i32, i32
  }
  func.func @transform_4(%arg0: i32) -> (i32, i32) {
    %c0_i32 = arith.constant 0 : i32
    %c0_i32_0 = arith.constant 0 : i32
    %c0_i32_1 = arith.constant 0 : i32
    return %c0_i32, %c0_i32_0 : i32, i32
  }
  func.func @transform_5(%arg0: i32) -> (i32, i32) {
    %c0_i32 = arith.constant 0 : i32
    %c0_i32_0 = arith.constant 0 : i32
    %c0_i32_1 = arith.constant 0 : i32
    return %c0_i32, %c0_i32_0 : i32, i32
  }
  func.func @transform_6(%arg0: i32) -> (i32, i32) {
    %c0_i32 = arith.constant 0 : i32
    %c0_i32_0 = arith.constant 0 : i32
    return %arg0, %c0_i32 : i32, i32
  }
}

</mosaic_0001>

<bundles_post_ra>
// kernel: block_layer_forward.1
= control target key start
LH: loop header
LB: loop body
LE: loop exit
PB: predicated region body
PF: predicated region fallthrough
CT: control target
= control target key end

     0   :  { %v643_v12 = vmov 0.0   ;;  %vm76_vm0 = vcmask 261120   ;;  %s644_s30 = smov 96   ;;  %s646_s13 = smov 64   ;;  %vm587_vm8 = vcmask 523264   ;;  %vm589_vm9 = vcmask 785408   ;;  %s899_s1 = inlined_call_operand.vmem [shape: f32[32,64], index: 1, kind: input, shape index: {}]   ;;  %s900_s3 = inlined_call_operand.vmem [shape: f32[32,64], index: 3, kind: input, shape index: {}]   ;;  %s901_s0 = inlined_call_operand.vmem [shape: f32[8,2,32], index: 0, kind: input, shape index: {}]   ;;  %s902_s2 = inlined_call_operand.vmem [shape: f32[1,64], index: 2, kind: input, shape index: {}]   ;;  %s903_s4 = inlined_call_operand.vmem [shape: f32[1,32], index: 4, kind: input, shape index: {}]   ;;  %s904_s5 = inlined_call_operand.vmem [shape: f32[32,32], index: 5, kind: input, shape index: {}]   ;;  %s905_s6 = inlined_call_operand.vmem [shape: f32[2,256], index: 6, kind: output, shape index: {}]  }
   0x1   :  { %v46_v0 = vld [vmem:[%s899_s1 + $0x18] sm:$0xff]  ;;  %v45_v1 = vld [vmem:[%s899_s1 + $0x10] sm:$0xff]  ;;  %v44_v3 = vld [vmem:[%s899_s1 + $0x8] sm:$0xff]  ;;  %vm597_vm10 = vcmask 1041408  }
   0x2   :  { %v691_v2 = vld [vmem:[%s900_s3 + $0x18] sm:$0xff]  ;;  %93 = vmatpush.msra.mxu0 %v46_v0  ;;  %v700_v4 = vld [vmem:[%s900_s3 + $0x10] sm:$0xff]  ;;  %v705_v5 = vld [vmem:[%s900_s3 + $0x8] sm:$0xff] }
   0x3   :  { %119 = vmatpush.msra.mxu1 %v691_v2  ;;  %v35_v6 = vld [vmem:[%s901_s0] sm:$0x3]  ;;  %v36_v7 = vld [vmem:[%s901_s0 + $0x2] sm:$0x3]  ;;  %176 = vmatpush.msra.mxu3 %v691_v2  ;;  %v37_v8 = vld [vmem:[%s901_s0 + $0x4] sm:$0x3] }
   0x4   :  { %94 = vmatpush.msra.mxu0 %v45_v1  ;;  %v38_v9 = vld [vmem:[%s901_s0 + $0x6] sm:$0x3]  ;;  %59 = vst [vmem:[#allocation1] ss:$4 sm:$0xff] %v35_v6  ;;  %v746_v14 = vld [vmem:[%s904_s5 + $0x18] sm:$0xff]  ;;  %v753_v15 = vld [vmem:[%s904_s5 + $0x10] sm:$0xff] }
   0x5   :  { %120 = vmatpush.msra.mxu1 %v700_v4  ;;  %v43_v10 = vld [vmem:[%s899_s1] sm:$0xff]  ;;  %61 = vst [vmem:[#allocation1 + $0x1] ss:$4 sm:$0xff] %v36_v7  ;;  %177 = vmatpush.msra.mxu3 %v700_v4  ;;  %v758_v16 = vld [vmem:[%s904_s5 + $0x8] sm:$0xff] }
   0x6   :  { %v727_v11 = vld [vmem:[%s900_s3] sm:$0xff]  ;;  %95 = vmatpush.msra.mxu0 %v44_v3  ;;  %63 = vst [vmem:[#allocation1 + $0x2] ss:$4 sm:$0xff] %v37_v8  ;;  %146 = vmatpush.msra.mxu2 %v746_v14  ;;  %v39_v49 = vld [vmem:[%s901_s0 + $0x8] sm:$0x3] }
   0x7   :  { %121 = vmatpush.msra.mxu1 %v705_v5  ;;  %65 = vst [vmem:[#allocation1 + $0x3] ss:$4 sm:$0xff] %v38_v9  ;;  %178 = vmatpush.msra.mxu3 %v705_v5  ;;  %v766_v17 = vld [vmem:[%s904_s5] sm:$0xff]  ;;  %v40_v50 = vld [vmem:[%s901_s0 + $0xa] sm:$0x3] }
   0x8   :  { %96 = vmatpush.msra.mxu0 %v43_v10  ;;  %147 = vmatpush.msra.mxu2 %v753_v15  ;;  %v786_v18 = vld [vmem:[%s902_s2] ss:$0 sm:$0xff]  ;;  %v41_v51 = vld [vmem:[%s901_s0 + $0xc] sm:$0x3]  ;;  %v42_v52 = vld [vmem:[%s901_s0 + $0xe] sm:$0x3] }
   0x9   :  { %122 = vmatpush.msra.mxu1 %v727_v11  ;;  %179 = vmatpush.msra.mxu3 %v727_v11  ;;  %v794_v22 = vld [vmem:[%s903_s4] ss:$0 sm:$0xff]  ;;  %67 = vst [vmem:[#allocation1 + $0x20] ss:$4 sm:$0xff] %v39_v49  ;;  %s645_s0 = smov 32  }
   0xa   :  { %123 = vmatmul.f32.vlgmr.msra.gmra.mxu1 %v643_v12  ;;  %300 = vmatpush.msrb.mxu0 %v691_v2  ;;  %69 = vst [vmem:[#allocation1 + $0x21] ss:$4 sm:$0xff] %v40_v50 }
   0xb   :  { %207 = vmatpush.msrb.mxu1 %v746_v14  ;;  %269 = vmatpush.msrb.mxu3 %v746_v14  ;;  %71 = vst [vmem:[#allocation1 + $0x22] ss:$4 sm:$0xff] %v41_v51 }
   0xc   :  { %301 = vmatpush.msrb.mxu0 %v700_v4  ;;  %148 = vmatpush.msra.mxu2 %v758_v16  ;;  %73 = vst [vmem:[#allocation1 + $0x23] ss:$4 sm:$0xff] %v42_v52 }
   0xd   :  { %208 = vmatpush.msrb.mxu1 %v753_v15  ;;  %270 = vmatpush.msrb.mxu3 %v753_v15 }
   0xe   :  { %v74_v13 = vld.sshfl [vmem:[#allocation1] sm:$0xff pattern:$0x73625140]  ;;  %302 = vmatpush.msrb.mxu0 %v705_v5  ;;  %149 = vmatpush.msra.mxu2 %v766_v17 }
   0xf   :  { %605 = vmatmul.msk.f32.vlgmr.msra.gmra.mxu0 %vm76_vm0, %v74_v13  ;;  %209 = vmatpush.msrb.mxu1 %v758_v16 }
  0x10   :  { %303 = vmatpush.msrb.mxu0 %v727_v11  ;;  %271 = vmatpush.msrb.mxu3 %v758_v16 }
  0x11   :  { %210 = vmatpush.msrb.mxu1 %v766_v17  ;;  %238 = vmatpush.msrb.mxu2 %v691_v2 }
  0x12   :  { %419 = vmatpush.msra.mxu0 %v691_v2  ;;  %272 = vmatpush.msrb.mxu3 %v766_v17 }
  0x13   :  { %331 = vmatpush.msra.mxu1 %v746_v14  ;;  %239 = vmatpush.msrb.mxu2 %v700_v4  ;;  %v75_v53 = vld.sshfl [vmem:[#allocation1 + $0x20] sm:$0xff pattern:$0x73625140] }
  0x14   :  { %420 = vmatpush.msra.mxu0 %v700_v4 }
  0x15   :  { %332 = vmatpush.msra.mxu1 %v753_v15  ;;  %240 = vmatpush.msrb.mxu2 %v705_v5 }
  0x16   :  { %421 = vmatpush.msra.mxu0 %v705_v5 }
  0x17   :  { %333 = vmatpush.msra.mxu1 %v758_v16  ;;  %241 = vmatpush.msrb.mxu2 %v727_v11 }
  0x18   :  { %422 = vmatpush.msra.mxu0 %v727_v11 }
  0x19   :  { %334 = vmatpush.msra.mxu1 %v766_v17  ;;  %606 = vmatmul.msk.f32.gmra.mxu0 %vm76_vm0, %v75_v53 }
  0x87   :  { %v124_v20 = vpop.f32.mrf.mxu1 }
  0x8c   :  { %v98_v19 = vpop.f32.mrf.mxu0 }
  0x8d   :  { %v789_v21 = vadd.f32 %v786_v18, %v98_v19 }
  0x8f   :  { %v797_v23 = vadd.f32 %v124_v20, %v789_v21 }
  0x91   :  { %156 = vrot.lane.b32.xlu0 %v797_v23, %s644_s30  ;;  %v128_v24 = vmul.f32 %v794_v22, %v797_v23 }
  0x93   :  { %v129_v25 = vmax.f32 %v128_v24, 0.0 }
  0x95   :  { %v130_v26 = vmin.f32 %v129_v25, 1.0 }
  0x96   :  { %v101_v57 = vpop.f32.mrf.mxu0 }
  0x97   :  { %607 = vmatmul.msk.f32.vlgmr.msra.gmra.mxu2 %vm76_vm0, %v130_v26 }
  0x98   :  { %362 = vmatpush.msra.mxu2 %v691_v2 }
  0x9a   :  { %363 = vmatpush.msra.mxu2 %v700_v4 }
  0x9c   :  { %364 = vmatpush.msra.mxu2 %v705_v5 }
  0x9e   :  { %365 = vmatpush.msra.mxu2 %v727_v11 }
 0x103   :  { %v157_v28 = vpop.permute.xlu0 %156 }
 0x11a   :  { %v151_v27 = vpop.f32.mrf.mxu2 }
 0x11b   :  { %vm154_vm1 = vcmp.ge.f32.partialorder %v151_v27, 0.75 }
 0x11c   :  { %v159_v29 = vsel %vm154_vm1, %v157_v28, 0.0 }
 0x11d   :  { %608 = vmatmul.msk.f32.vlgmr.msra.gmra.mxu3 %vm76_vm0, %v159_v29 }
 0x11e   :  { %389 = vmatpush.msra.mxu3 %v746_v14 }
 0x120   :  { %390 = vmatpush.msra.mxu3 %v753_v15 }
 0x122   :  { %391 = vmatpush.msra.mxu3 %v758_v16 }
 0x124   :  { %392 = vmatpush.msra.mxu3 %v766_v17 }
 0x1a0   :  { %v181_v30 = vpop.f32.mrf.mxu3 }
 0x1a1   :  { %v185_v31 = vrot.slane %v181_v30, 6 }
 0x1a3   :  { %v814_v32 = vadd.f32 %v185_v31, %v789_v21 }
 0x1a5   :  { %v188_v33 = vmul.f32 %v794_v22, %v814_v32  ;;  %v217_v34 = vrot.slane %v814_v32, 2 }
 0x1a7   :  { %v189_v35 = vmax.f32 %v188_v33, 0.0  ;;  %218 = vrot.lane.b32.xlu0 %v217_v34, %s644_s30 }
 0x1a9   :  { %v190_v36 = vmin.f32 %v189_v35, 1.0 }
 0x1ab   :  { %v192_v37 = vrot.slane %v190_v36, 2 }
 0x1ad   :  { %609 = vmatmul.msk.f32.vlgmr.msrb.gmra.mxu1 %vm76_vm0, %v192_v37 }
 0x1ae   :  { %450 = vmatpush.msrb.mxu1 %v746_v14 }
 0x1b0   :  { %451 = vmatpush.msrb.mxu1 %v753_v15 }
 0x1b2   :  { %452 = vmatpush.msrb.mxu1 %v758_v16 }
 0x1b4   :  { %453 = vmatpush.msrb.mxu1 %v766_v17 }
 0x219   :  { %v219_v39 = vpop.permute.xlu0 %218 }
 0x22a   :  { %v212_v38 = vpop.f32.mrf.mxu1 }
 0x22b   :  { %vm215_vm2 = vcmp.ge.f32.partialorder %v212_v38, 0.75 }
 0x22c   :  { %v221_v40 = vsel %vm215_vm2, %v219_v39, %v159_v29 }
 0x22d   :  { %610 = vmatmul.msk.f32.vlgmr.msrb.gmra.mxu2 %vm76_vm0, %v221_v40 }
 0x22e   :  { %481 = vmatpush.msrb.mxu2 %v691_v2 }
 0x230   :  { %482 = vmatpush.msrb.mxu2 %v700_v4 }
 0x232   :  { %483 = vmatpush.msrb.mxu2 %v705_v5 }
 0x234   :  { %484 = vmatpush.msrb.mxu2 %v727_v11 }
 0x2b0   :  { %v243_v41 = vpop.f32.mrf.mxu2 }
 0x2b1   :  { %v247_v42 = vrot.slane %v243_v41, 4 }
 0x2b3   :  { %v831_v43 = vadd.f32 %v247_v42, %v789_v21 }
 0x2b5   :  { %v250_v44 = vmul.f32 %v794_v22, %v831_v43  ;;  %v279_v45 = vrot.slane %v831_v43, 4 }
 0x2b7   :  { %v251_v46 = vmax.f32 %v250_v44, 0.0  ;;  %280 = vrot.lane.b32.xlu1 %v279_v45, %s644_s30 }
 0x2b9   :  { %v252_v47 = vmin.f32 %v251_v46, 1.0 }
 0x2bb   :  { %v254_v48 = vrot.slane %v252_v47, 4 }
 0x2bd   :  { %611 = vmatmul.msk.f32.vlgmr.msrb.gmra.mxu3 %vm76_vm0, %v254_v48 }
 0x2be   :  { %512 = vmatpush.msrb.mxu3 %v746_v14 }
 0x2c0   :  { %513 = vmatpush.msrb.mxu3 %v753_v15 }
 0x2c2   :  { %514 = vmatpush.msrb.mxu3 %v758_v16 }
 0x2c4   :  { %515 = vmatpush.msrb.mxu3 %v766_v17 }
 0x329   :  { %v281_v55 = vpop.permute.xlu1 %280 }
 0x340   :  { %v274_v54 = vpop.f32.mrf.mxu3 }
 0x341   :  { %vm277_vm3 = vcmp.ge.f32.partialorder %v274_v54, 0.75 }
 0x342   :  { %v283_v56 = vsel %vm277_vm3, %v281_v55, %v221_v40 }
 0x343   :  { %612 = vmatmul.msk.f32.vlgmr.msrb.gmra.mxu0 %vm76_vm0, %v283_v56 }
 0x344   :  { %543 = vmatpush.msrb.mxu0 %v691_v2 }
 0x346   :  { %544 = vmatpush.msrb.mxu0 %v700_v4 }
 0x348   :  { %545 = vmatpush.msrb.mxu0 %v705_v5  ;;  %v866_v5 = vadd.f32 %v786_v18, %v101_v57 }
 0x34a   :  { %546 = vmatpush.msrb.mxu0 %v727_v11 }
 0x3c0   :  { %v305_v58 = vpop.f32.mrf.mxu0 }
 0x3c1   :  { %v309_v59 = vrot.slane %v305_v58, 2 }
 0x3c3   :  { %v311_v60 = vadd.f32 %v309_v59, %v789_v21 }
 0x3c5   :  { %v312_v61 = vmul.f32 %v794_v22, %v311_v60  ;;  %v341_v62 = vrot.slane %v311_v60, 6 }
 0x3c7   :  { %v313_v63 = vmax.f32 %v312_v61, 0.0  ;;  %342 = vrot.lane.b32.xlu1 %v341_v62, %s644_s30 }
 0x3c9   :  { %v314_v0 = vmin.f32 %v313_v63, 1.0 }
 0x3cb   :  { %v316_v1 = vrot.slane %v314_v0, 6 }
 0x3cd   :  { %613 = vmatmul.msk.f32.vlgmr.msra.gmra.mxu1 %vm76_vm0, %v316_v1 }
 0x439   :  { %v343_v3 = vpop.permute.xlu1 %342 }
 0x44a   :  { %v336_v2 = vpop.f32.mrf.mxu1 }
 0x44b   :  { %vm339_vm4 = vcmp.ge.f32.partialorder %v336_v2, 0.75 }
 0x44c   :  { %v345_v4 = vsel %vm339_vm4, %v343_v3, %v283_v56 }
 0x44d   :  { %614 = vmatmul.msk.f32.vlgmr.msra.gmra.mxu2 %vm76_vm0, %v345_v4 }
 0x4d0   :  { %v367_v6 = vpop.f32.mrf.mxu2 }
 0x4d1   :  { %v869_v7 = vadd.f32 %v367_v6, %v866_v5 }
 0x4d3   :  { %v371_v8 = vmul.f32 %v794_v22, %v869_v7  ;;  %399 = vrot.lane.b32.xlu2 %v869_v7, %s644_s30 }
 0x4d5   :  { %v372_v9 = vmax.f32 %v371_v8, 0.0 }
 0x4d7   :  { %v373_v10 = vmin.f32 %v372_v9, 1.0 }
 0x4d9   :  { %615 = vmatmul.msk.f32.vlgmr.msra.gmra.mxu3 %vm76_vm0, %v373_v10 }
 0x52d   :  { %v400_v12 = vpop.permute.xlu2 %399 }
 0x55c   :  { %v394_v11 = vpop.f32.mrf.mxu3 }
 0x55d   :  { %vm397_vm5 = vcmp.ge.f32.partialorder %v394_v11, 0.75 }
 0x55e   :  { %v402_v13 = vsel %vm397_vm5, %v400_v12, %v345_v4 }
 0x55f   :  { %616 = vmatmul.msk.f32.vlgmr.msra.gmra.mxu0 %vm76_vm0, %v402_v13 }
 0x5dc   :  { %v424_v14 = vpop.f32.mrf.mxu0 }
 0x5dd   :  { %v428_v15 = vrot.slane %v424_v14, 6 }
 0x5df   :  { %v430_v16 = vadd.f32 %v428_v15, %v866_v5 }
 0x5e1   :  { %v431_v17 = vmul.f32 %v794_v22, %v430_v16  ;;  %v460_v18 = vrot.slane %v430_v16, 2  ;;  %627 = vtanh.f32 %v430_v16 }
 0x5e2   :  { %629 = vtanh.f32 %v814_v32 }
 0x5e3   :  { %v432_v19 = vmax.f32 %v431_v17, 0.0  ;;  %461 = vrot.lane.b32.xlu2 %v460_v18, %s644_s30 }
 0x5e5   :  { %v433_v20 = vmin.f32 %v432_v19, 1.0 }
 0x5e7   :  { %v628_v21 = vpop.eup %627  ;;  %v435_v24 = vrot.slane %v433_v20, 2 }
 0x5e8   :  { %v572_v25 = vrot.slane %v628_v21, 2  ;;  %v630_v37 = vpop.eup %629 }
 0x5e9   :  { %617 = vmatmul.msk.f32.vlgmr.msrb.gmra.mxu1 %vm76_vm0, %v435_v24  ;;  %v557_v41 = vrot.slane %v630_v37, 2 }
 0x5ea   :  { %573 = vrot.lane.b32.xlu1 %v572_v25, %s645_s0 }
 0x63d   :  { %v462_v27 = vpop.permute.xlu2 %461 }
 0x65c   :  { %v574_v54 = vpop.permute.xlu1 %573 }
 0x666   :  { %v455_v26 = vpop.f32.mrf.mxu1 }
 0x667   :  { %vm458_vm6 = vcmp.ge.f32.partialorder %v455_v26, 0.75 }
 0x668   :  { %v464_v28 = vsel %vm458_vm6, %v462_v27, %v402_v13 }
 0x669   :  { %618 = vmatmul.msk.f32.vlgmr.msrb.gmra.mxu2 %vm76_vm0, %v464_v28 }
 0x6ec   :  { %v486_v29 = vpop.f32.mrf.mxu2 }
 0x6ed   :  { %v490_v30 = vrot.slane %v486_v29, 4 }
 0x6ef   :  { %v492_v31 = vadd.f32 %v490_v30, %v866_v5 }
 0x6f1   :  { %v493_v33 = vmul.f32 %v794_v22, %v492_v31  ;;  %v522_v34 = vrot.slane %v492_v31, 4  ;;  %631 = vtanh.f32 %v492_v31 }
 0x6f2   :  { %633 = vtanh.f32 %v831_v43 }
 0x6f3   :  { %v494_v35 = vmax.f32 %v493_v33, 0.0  ;;  %523 = vrot.lane.b32.xlu0 %v522_v34, %s644_s30  ;;  %635 = vtanh.f32 %v311_v60 }
 0x6f5   :  { %v495_v36 = vmin.f32 %v494_v35, 1.0 }
 0x6f7   :  { %v632_v38 = vpop.eup %631  ;;  %v497_v39 = vrot.slane %v495_v36, 4 }
 0x6f8   :  { %v577_v40 = vrot.slane %v632_v38, 4  ;;  %v634_v22 = vpop.eup %633 }
 0x6f9   :  { %619 = vmatmul.msk.f32.vlgmr.msrb.gmra.mxu3 %vm76_vm0, %v497_v39  ;;  %v636_v32 = vpop.eup %635  ;;  %v562_v42 = vrot.slane %v634_v22, 4 }
 0x6fa   :  { %578 = vrot.lane.b32.xlu2 %v577_v40, %s646_s13  ;;  %v567_v44 = vrot.slane %v636_v32, 6 }
 0x6fb   :  { %558 = vrot.lane.b32.xlu0 %v557_v41, %s645_s0 }
 0x702   :  { %563 = vrot.lane.b32.xlu2 %v562_v42, %s646_s13 }
 0x703   :  { %568 = vrot.lane.b32.xlu0 %v567_v44, %s644_s30 }
 0x754   :  { %v579_v53 = vpop.permute.xlu2 %578 }
 0x75c   :  { %v564_v62 = vpop.permute.xlu2 %563 }
 0x765   :  { %v524_v46 = vpop.permute.xlu0 %523 }
 0x76d   :  { %v559_v52 = vpop.permute.xlu0 %558 }
 0x775   :  { %v569_v60 = vpop.permute.xlu0 %568 }
 0x77c   :  { %v517_v45 = vpop.f32.mrf.mxu3 }
 0x77d   :  { %vm520_vm7 = vcmp.ge.f32.partialorder %v517_v45, 0.75 }
 0x77e   :  { %v526_v47 = vsel %vm520_vm7, %v524_v46, %v464_v28 }
 0x77f   :  { %620 = vmatmul.msk.f32.vlgmr.msrb.gmra.mxu0 %vm76_vm0, %v526_v47 }
 0x7fc   :  { %v548_v43 = vpop.f32.mrf.mxu0 }
 0x7fd   :  { %v552_v48 = vrot.slane %v548_v43, 2 }
 0x7ff   :  { %v554_v49 = vadd.f32 %v552_v48, %v866_v5 }
 0x801   :  { %637 = vtanh.f32 %v554_v49 }
 0x802   :  { %639 = vtanh.f32 %v797_v23 }
 0x803   :  { %641 = vtanh.f32 %v869_v7 }
 0x807   :  { %v638_v50 = vpop.eup %637 }
 0x808   :  { %v582_v51 = vrot.slane %v638_v50, 6  ;;  %v640_v55 = vpop.eup %639 }
 0x809   :  { %v642_v56 = vpop.eup %641  ;;  %v586_v58 = vsel %vm76_vm0, %v640_v55, %v559_v52 }
 0x80a   :  { %583 = vrot.lane.b32.xlu1 %v582_v51, %s644_s30  ;;  %v591_v57 = vsel %vm76_vm0, %v642_v56, %v574_v54  ;;  %v588_v0 = vsel %vm587_vm8, %v586_v58, %v564_v62 }
 0x80b   :  { %v592_v59 = vsel %vm587_vm8, %v591_v57, %v579_v53  ;;  %v590_v1 = vsel %vm589_vm9, %v588_v0, %v569_v60 }
 0x87c   :  { %v584_v61 = vpop.permute.xlu1 %583 }
 0x87d   :  { %v593_v63 = vsel %vm589_vm9, %v592_v59, %v584_v61 }
 0x87e   :  { %v596_v23 = vrot.slane %v593_v63, 6 }
 0x880   :  { %v598_v2 = vsel %vm597_vm10, %v590_v1, %v596_v23 }
 0x881   :  { %600 = vst [vmem:[%s905_s6] sm:$0xf] %v598_v2 }

</bundles_post_ra>
